<compile_context>
chip_gen: v7x
topology: tpu7x:2x2x1
jax: 0.10.0
libtpu: 0.0.40
codegen_flags: <defaults>
</compile_context>

<pallas_src>
import jax
import jax.numpy as jnp
from jax.experimental import pallas as pl
from jax.experimental.pallas import tpu as pltpu

EPS = 1e-5


def ann_kernel(x_ref, w1_ref, b1_ref, w2_ref, b2_ref, w3_ref, b3_ref, o_ref):
    # Layer 1 (BatchNorm already folded into w1/b1) + ReLU
    h = jnp.dot(x_ref[...], w1_ref[...], preferred_element_type=jnp.float32) + b1_ref[...]
    h = jnp.maximum(h, 0.0)
    # Layer 2 + ReLU
    h = jnp.dot(h, w2_ref[...], preferred_element_type=jnp.float32) + b2_ref[...]
    h = jnp.maximum(h, 0.0)
    # Layer 3 (output padded to a lane-dense 128-wide block)
    out = jnp.dot(h, w3_ref[...], preferred_element_type=jnp.float32) + b3_ref[...]
    o_ref[...] = out.astype(o_ref.dtype)


def ann_forward(x, params, *, tile_b=512):
    """x: [B, n_inputs] float32. params: weights stored (in, out), biases (1, out)."""
    B, n_in = x.shape
    n_hidden1 = params["w1"].shape[1]
    n_hidden2 = params["w2"].shape[1]
    n_classes = params["w3"].shape[1]

    # ---- BatchNorm1d (training-mode batch stats) hoisted + folded into layer 1 ----
    mean = jnp.mean(x, axis=0, keepdims=True)                       # [1, n_in]
    var = jnp.mean((x - mean) ** 2, axis=0, keepdims=True)          # biased variance
    s = params["gamma"] * jax.lax.rsqrt(var + EPS)                  # [1, n_in]
    t = params["beta"] - mean * s                                   # [1, n_in]
    w1_eff = s.reshape(-1, 1) * params["w1"]                        # [n_in, 20]
    b1_eff = t @ params["w1"] + params["b1"]                        # [1, 20]

    # ---- Lane-dense output: pad class dim to a multiple of 128 ----
    out_pad = ((n_classes + 127) // 128) * 128
    w3_pad = jnp.zeros((n_hidden2, out_pad), jnp.float32).at[:, :n_classes].set(params["w3"])
    b3_pad = jnp.zeros((1, out_pad), jnp.float32).at[:, :n_classes].set(params["b3"])

    # ---- Batch tiling (stats already computed on the true batch, so padding is safe) ----
    tb = min(tile_b, ((B + 7) // 8) * 8)        # multiple of 8 sublanes
    n_tiles = pl.cdiv(B, tb)
    B_pad = n_tiles * tb
    x_p = x if B_pad == B else jnp.pad(x, ((0, B_pad - B), (0, 0)))

    flops = 2 * B_pad * (n_in * n_hidden1 + n_hidden1 * n_hidden2 + n_hidden2 * out_pad)
    bytes_accessed = 4 * B_pad * (n_in + out_pad)

    out = pl.pallas_call(
        ann_kernel,
        out_shape=jax.ShapeDtypeStruct((B_pad, out_pad), jnp.float32),
        grid_spec=pltpu.PrefetchScalarGridSpec(
            num_scalar_prefetch=0,
            grid=(n_tiles,),
            in_specs=[
                pl.BlockSpec((tb, n_in), lambda i: (i, 0)),          # x: tiled over batch
                pl.BlockSpec((n_in, n_hidden1), lambda i: (0, 0)),   # weights: VMEM-resident
                pl.BlockSpec((1, n_hidden1), lambda i: (0, 0)),
                pl.BlockSpec((n_hidden1, n_hidden2), lambda i: (0, 0)),
                pl.BlockSpec((1, n_hidden2), lambda i: (0, 0)),
                pl.BlockSpec((n_hidden2, out_pad), lambda i: (0, 0)),
                pl.BlockSpec((1, out_pad), lambda i: (0, 0)),
            ],
            out_specs=pl.BlockSpec((tb, out_pad), lambda i: (i, 0)),
        ),
        compiler_params=pltpu.CompilerParams(
            dimension_semantics=("parallel",),                       # 2-TC sharding on v7x
        ),
        cost_estimate=pl.CostEstimate(
            flops=flops, transcendentals=0, bytes_accessed=bytes_accessed),
    )(x_p, w1_eff, b1_eff, params["w2"], params["b2"], w3_pad, b3_pad)

    return out[:B, :n_classes]


def xavier_uniform(key, fan_in, fan_out):
    # Matches torch.nn.init.xavier_uniform_ with gain=1 (symmetric dist, so
    # sampling directly in (in, out) layout is equivalent to the (out, in) transpose).
    bound = jnp.sqrt(6.0 / (fan_in + fan_out))
    return jax.random.uniform(key, (fan_in, fan_out), jnp.float32, -bound, bound)


def init_params(key, n_inputs, n_classes):
    k1, k2, k3 = jax.random.split(key, 3)
    return {
        # BatchNorm1d affine params (default init: gamma=1, beta=0)
        "gamma": jnp.ones((1, n_inputs), jnp.float32),
        "beta": jnp.zeros((1, n_inputs), jnp.float32),
        # Linear layers: xavier_uniform weights, zero biases
        "w1": xavier_uniform(k1, n_inputs, 20),
        "b1": jnp.zeros((1, 20), jnp.float32),
        "w2": xavier_uniform(k2, 20, 8),
        "b2": jnp.zeros((1, 8), jnp.float32),
        "w3": xavier_uniform(k3, 8, n_classes),
        "b3": jnp.zeros((1, n_classes), jnp.float32),
    }


def reference_forward(x, params):
    # Pure-JAX reference mirroring PyTorch training-mode BatchNorm1d + the MLP.
    mean = jnp.mean(x, axis=0, keepdims=True)
    var = jnp.mean((x - mean) ** 2, axis=0, keepdims=True)
    h = (x - mean) / jnp.sqrt(var + EPS) * params["gamma"] + params["beta"]
    h = jnp.maximum(h @ params["w1"] + params["b1"], 0.0)
    h = jnp.maximum(h @ params["w2"] + params["b2"], 0.0)
    return h @ params["w3"] + params["b3"]


if __name__ == "__main__":
    n_inputs = 32
    number_of_classes = 4
    batch = 8

    key = jax.random.PRNGKey(0)
    kx, kp = jax.random.split(key)

    x = jax.random.normal(kx, (batch, n_inputs), jnp.float32)
    params = init_params(kp, n_inputs, number_of_classes)

    fwd = jax.jit(ann_forward)
    out = jax.block_until_ready(fwd(x, params))

    ref = reference_forward(x, params)
    assert out.shape == (batch, number_of_classes)
    assert jnp.allclose(out, ref, atol=1e-4, rtol=1e-4), "mismatch vs reference"

    print("KERNEL_OK")
</pallas_src>

<mosaic_0001>
module attributes {stable_mosaic.version = 11 : i64} {
  func.func @ann_kernel(%arg0: i32, %arg1: memref<8x32xf32, #tpu.memory_space<vmem>>, %arg2: memref<32x20xf32, #tpu.memory_space<vmem>>, %arg3: memref<1x20xf32, #tpu.memory_space<vmem>>, %arg4: memref<20x8xf32, #tpu.memory_space<vmem>>, %arg5: memref<1x8xf32, #tpu.memory_space<vmem>>, %arg6: memref<8x128xf32, #tpu.memory_space<vmem>>, %arg7: memref<1x128xf32, #tpu.memory_space<vmem>>, %arg8: memref<8x128xf32, #tpu.memory_space<vmem>>) attributes {dimension_semantics = [#tpu.dimension_semantics<parallel>], iteration_bounds = array<i64: 1>, scalar_prefetch = 0 : i64, scratch_operands = 0 : i64, tpu.core_type = #tpu.core_type<tc>, window_params = [{transform_indices = @transform_0, window_bounds = array<i64: 8, 32>}, {pipeline_mode = #tpu.pipeline_mode<synchronous>, transform_indices = @transform_1, window_bounds = array<i64: 32, 20>}, {pipeline_mode = #tpu.pipeline_mode<synchronous>, transform_indices = @transform_2, window_bounds = array<i64: 1, 20>}, {pipeline_mode = #tpu.pipeline_mode<synchronous>, transform_indices = @transform_3, window_bounds = array<i64: 20, 8>}, {pipeline_mode = #tpu.pipeline_mode<synchronous>, transform_indices = @transform_4, window_bounds = array<i64: 1, 8>}, {pipeline_mode = #tpu.pipeline_mode<synchronous>, transform_indices = @transform_5, window_bounds = array<i64: 8, 128>}, {pipeline_mode = #tpu.pipeline_mode<synchronous>, transform_indices = @transform_6, window_bounds = array<i64: 1, 128>}, {transform_indices = @transform_7, window_bounds = array<i64: 8, 128>}]} {
    %c0 = arith.constant 0 : index
    %c0_0 = arith.constant 0 : index
    %0 = vector.load %arg1[%c0, %c0_0] : memref<8x32xf32, #tpu.memory_space<vmem>>, vector<8x32xf32>
    %c0_1 = arith.constant 0 : index
    %c0_2 = arith.constant 0 : index
    %1 = vector.load %arg2[%c0_1, %c0_2] : memref<32x20xf32, #tpu.memory_space<vmem>>, vector<32x20xf32>
    %cst = arith.constant dense<0.000000e+00> : vector<8x20xf32>
    %2 = tpu.matmul %0, %1, %cst {dimension_numbers = #tpu.dot_dimension_numbers<[1], [0], [0], [1], [0, 0, 1, 1], [], []>} : vector<8x32xf32>, vector<32x20xf32>, vector<8x20xf32> -> vector<8x20xf32>
    %c0_3 = arith.constant 0 : index
    %c0_4 = arith.constant 0 : index
    %3 = vector.load %arg3[%c0_3, %c0_4] : memref<1x20xf32, #tpu.memory_space<vmem>>, vector<1x20xf32>
    %4 = vector.broadcast %3 : vector<1x20xf32> to vector<8x20xf32>
    %5 = arith.addf %2, %4 : vector<8x20xf32>
    %cst_5 = arith.constant 0.000000e+00 : f32
    %6 = vector.broadcast %cst_5 : f32 to vector<8x20xf32>
    %7 = arith.maximumf %5, %6 : vector<8x20xf32>
    %c0_6 = arith.constant 0 : index
    %c0_7 = arith.constant 0 : index
    %8 = vector.load %arg4[%c0_6, %c0_7] : memref<20x8xf32, #tpu.memory_space<vmem>>, vector<20x8xf32>
    %cst_8 = arith.constant dense<0.000000e+00> : vector<8x8xf32>
    %9 = tpu.matmul %7, %8, %cst_8 {dimension_numbers = #tpu.dot_dimension_numbers<[1], [0], [0], [1], [0, 0, 1, 1], [], []>} : vector<8x20xf32>, vector<20x8xf32>, vector<8x8xf32> -> vector<8x8xf32>
    %c0_9 = arith.constant 0 : index
    %c0_10 = arith.constant 0 : index
    %10 = vector.load %arg5[%c0_9, %c0_10] : memref<1x8xf32, #tpu.memory_space<vmem>>, vector<1x8xf32>
    %11 = vector.broadcast %10 : vector<1x8xf32> to vector<8x8xf32>
    %12 = arith.addf %9, %11 : vector<8x8xf32>
    %cst_11 = arith.constant 0.000000e+00 : f32
    %13 = vector.broadcast %cst_11 : f32 to vector<8x8xf32>
    %14 = arith.maximumf %12, %13 : vector<8x8xf32>
    %c0_12 = arith.constant 0 : index
    %c0_13 = arith.constant 0 : index
    %15 = vector.load %arg6[%c0_12, %c0_13] : memref<8x128xf32, #tpu.memory_space<vmem>>, vector<8x128xf32>
    %cst_14 = arith.constant dense<0.000000e+00> : vector<8x128xf32>
    %16 = tpu.matmul %14, %15, %cst_14 {dimension_numbers = #tpu.dot_dimension_numbers<[1], [0], [0], [1], [0, 0, 1, 1], [], []>} : vector<8x8xf32>, vector<8x128xf32>, vector<8x128xf32> -> vector<8x128xf32>
    %c0_15 = arith.constant 0 : index
    %c0_16 = arith.constant 0 : index
    %17 = vector.load %arg7[%c0_15, %c0_16] : memref<1x128xf32, #tpu.memory_space<vmem>>, vector<1x128xf32>
    %18 = vector.broadcast %17 : vector<1x128xf32> to vector<8x128xf32>
    %19 = arith.addf %16, %18 : vector<8x128xf32>
    %c0_17 = arith.constant 0 : index
    %c0_18 = arith.constant 0 : index
    %20 = vector.load %arg8[%c0_17, %c0_18] : memref<8x128xf32, #tpu.memory_space<vmem>>, vector<8x128xf32>
    tpu.vector_store %arg8[%c0_17, %c0_18], %19 {strides = array<i32>} : memref<8x128xf32, #tpu.memory_space<vmem>>, vector<8x128xf32>,
    return
  }
  func.func @transform_0(%arg0: i32) -> (i32, i32) {
    %c0_i32 = arith.constant 0 : i32
    %c0_i32_0 = arith.constant 0 : i32
    return %arg0, %c0_i32 : i32, i32
  }
  func.func @transform_1(%arg0: i32) -> (i32, i32) {
    %c0_i32 = arith.constant 0 : i32
    %c0_i32_0 = arith.constant 0 : i32
    %c0_i32_1 = arith.constant 0 : i32
    return %c0_i32, %c0_i32_0 : i32, i32
  }
  func.func @transform_2(%arg0: i32) -> (i32, i32) {
    %c0_i32 = arith.constant 0 : i32
    %c0_i32_0 = arith.constant 0 : i32
    %c0_i32_1 = arith.constant 0 : i32
    return %c0_i32, %c0_i32_0 : i32, i32
  }
  func.func @transform_3(%arg0: i32) -> (i32, i32) {
    %c0_i32 = arith.constant 0 : i32
    %c0_i32_0 = arith.constant 0 : i32
    %c0_i32_1 = arith.constant 0 : i32
    return %c0_i32, %c0_i32_0 : i32, i32
  }
  func.func @transform_4(%arg0: i32) -> (i32, i32) {
    %c0_i32 = arith.constant 0 : i32
    %c0_i32_0 = arith.constant 0 : i32
    %c0_i32_1 = arith.constant 0 : i32
    return %c0_i32, %c0_i32_0 : i32, i32
  }
  func.func @transform_5(%arg0: i32) -> (i32, i32) {
    %c0_i32 = arith.constant 0 : i32
    %c0_i32_0 = arith.constant 0 : i32
    %c0_i32_1 = arith.constant 0 : i32
    return %c0_i32, %c0_i32_0 : i32, i32
  }
  func.func @transform_6(%arg0: i32) -> (i32, i32) {
    %c0_i32 = arith.constant 0 : i32
    %c0_i32_0 = arith.constant 0 : i32
    %c0_i32_1 = arith.constant 0 : i32
    return %c0_i32, %c0_i32_0 : i32, i32
  }
  func.func @transform_7(%arg0: i32) -> (i32, i32) {
    %c0_i32 = arith.constant 0 : i32
    %c0_i32_0 = arith.constant 0 : i32
    return %arg0, %c0_i32 : i32, i32
  }
}

</mosaic_0001>

<bundles_post_ra>
// kernel: ann_forward.1
= control target key start
LH: loop header
LB: loop body
LE: loop exit
PB: predicated region body
PF: predicated region fallthrough
CT: control target
= control target key end

     0   :  { %v344_v0 = vmov 0.0|0.0   ;;  %vm345_vm0 = vmmov 0   ;;  %v346_v4 = vmov 0.0   ;;  %vm38_vm1 = vcmask 261120   ;;  %s429_s1 = inlined_call_operand.vmem [shape: f32[32,20], index: 1, kind: input, shape index: {}]   ;;  %s430_s0 = inlined_call_operand.vmem [shape: f32[8,32], index: 0, kind: input, shape index: {}]   ;;  %s431_s3 = inlined_call_operand.vmem [shape: f32[20,8], index: 3, kind: input, shape index: {}]   ;;  %s432_s2 = inlined_call_operand.vmem [shape: f32[1,20], index: 2, kind: input, shape index: {}]   ;;  %s433_s5 = inlined_call_operand.vmem [shape: f32[8,128], index: 5, kind: input, shape index: {}]   ;;  %s434_s4 = inlined_call_operand.vmem [shape: f32[1,8], index: 4, kind: input, shape index: {}]   ;;  %s435_s6 = inlined_call_operand.vmem [shape: f32[1,128], index: 6, kind: input, shape index: {}]   ;;  %s436_s7 = inlined_call_operand.vmem [shape: f32[8,128], index: 7, kind: output, shape index: {}]  }
   0x1   :  { %332 = vmatprep.subr.bf16.mxu0 %v344_v0  ;;  %v27_v1 = vld [vmem:[%s429_s1] sm:$0xff]  ;;  %v28_v2 = vld [vmem:[%s429_s1 + $0x8] sm:$0xff]  ;;  %v29_v3 = vld [vmem:[%s429_s1 + $0x10] sm:$0xff]  ;;  %315 = vmatprep.mubr.msk.f32.mxu0 %vm345_vm0, %v346_v4  ;;  %vm127_vm2 = vcmask 1043456   ;;  %vm123_vm3 = vcmask 162816   ;;  %vm210_vm4 = vcmask 64512  }
   0x2   :  { %v333_v5 = vpack.c.bf16 %v28_v2, %v27_v1  ;;  %v30_v6 = vld [vmem:[%s429_s1 + $0x18] sm:$0xff]  ;;  %338 = vmatprep.subr.bf16.mxu1 %v344_v0  ;;  %324 = vmatprep.mubr.msk.f32.mxu1 %vm345_vm0, %v346_v4  ;;  %v26_v8 = vld [vmem:[%s430_s0] sm:$0xff]  ;;  %v114_v10 = vld [vmem:[%s431_s3 + $0x8] sm:$0xff] }
   0x3   :  { %v336_v7 = vpack.c.bf16 %v30_v6, %v29_v3  ;;  %v113_v9 = vld [vmem:[%s431_s3] sm:$0xff]  ;;  %v115_v12 = vld [vmem:[%s431_s3 + $0x10] sm:$0xf] }
   0x4   :  { %334 = vmatpush3.bf16.msra.mxu0 %v333_v5  ;;  %v339_v11 = vpack.c.bf16 %v114_v10, %v113_v9  ;;  %v289_v13 = vld [vmem:[%s432_s2] ss:$0 sm:$0xff] }
   0x5   :  { %335 = vmatprep.subr.bf16.mxu0 %v344_v0  ;;  %v202_v18 = vld [vmem:[%s433_s5] sm:$0xff] }
   0x6   :  { %340 = vmatpush3.bf16.msra.mxu1 %v339_v11  ;;  %v291_v19 = vld [vmem:[%s434_s4] ss:$0 sm:$0xff] }
   0x7   :  { %322 = vmatprep.subr.mxu1 %v346_v4  ;;  %v294_v24 = vld [vmem:[%s435_s6] ss:$0 sm:$0xff] }
   0x8   :  { %337 = vmatpush3.bf16.msra.mxu0 %v336_v7 }
   0xa   :  { %323 = vmatpush3.msk.msra.mxu1 %vm127_vm2, %v115_v12 }
   0xb   :  { %316 = vmatmul.mubr.msk.f32.vlgmr.msra.gmra.mrb[0].mxu0 %vm38_vm1, %v26_v8  ;;  %327 = vmatprep.subr.mxu1 %v346_v4 }
  0xde   :  { %v108_v14 = vpop.f32.mrb[0].mxu0 }
  0xdf   :  { %v109_v15 = vadd.f32 %v289_v13, %v108_v14  ;;  %v317_v16 = vpop.f32.mrb[1].mxu0 }
  0xe1   :  { %v112_v17 = vmax.f32 %v109_v15, 0.0 }
  0xe3   :  { %325 = vmatmul.mubr.msk.f32.vlgmr.msra.gmra.mrb[0].mxu1 %vm123_vm3, %v112_v17 }
  0xe4   :  { %329 = vmatprep.mubr.msk.f32.mxu1 %vm345_vm0, %v346_v4  ;;  %328 = vmatpush3.msra.mxu1 %v202_v18 }
 0x1b6   :  { %v197_v20 = vpop.f32.mrb[0].mxu1 }
 0x1b7   :  { %v198_v21 = vadd.f32 %v291_v19, %v197_v20  ;;  %v326_v22 = vpop.f32.mrb[1].mxu1 }
 0x1b9   :  { %v201_v23 = vmax.f32 %v198_v21, 0.0 }
 0x1bb   :  { %330 = vmatmul.mubr.msk.f32.vlgmr.msra.gmra.mrb[2].mxu1 %vm210_vm4, %v201_v23 }
 0x28e   :  { %v280_v25 = vpop.f32.mrb[2].mxu1 }
 0x28f   :  { %v281_v26 = vadd.f32 %v294_v24, %v280_v25  ;;  %v331_v27 = vpop.f32.mrb[3].mxu1 }
 0x291   :  { %284 = vst [vmem:[%s436_s7] sm:$0xff] %v281_v26 }

</bundles_post_ra>
